<compile_context>
chip_gen: v7x
topology: tpu7x:2x2x1
jax: 0.10.0
libtpu: 0.0.40
codegen_flags: <defaults>
</compile_context>

<pallas_src>
import math

import jax
import jax.numpy as jnp
from jax.experimental import pallas as pl
from jax.experimental.pallas import tpu as pltpu


# ---------------------------------------------------------------------------
# Path A (default): single whole-array HBM -> HBM DMA, bypassing VMEM / vregs.
# ---------------------------------------------------------------------------
def _flatten_dma_kernel(x_ref, o_ref, sem):
    cp = pltpu.make_async_copy(x_ref, o_ref, sem)
    cp.start()
    cp.wait()


# ---------------------------------------------------------------------------
# Path B (fallback): lane-dense tiled VMEM copy with byte-targeted blocks.
# ---------------------------------------------------------------------------
def _flatten_copy_kernel(x_ref, o_ref):
    o_ref[...] = x_ref[...]


def _pick_tiles(batch, feat, itemsize, target_bytes):
    """Byte-targeted tile sizes for the tiled-VMEM fallback path."""
    row_bytes = feat * itemsize
    min_rows = batch if batch < 8 else 8
    if min_rows * row_bytes <= target_bytes:
        # Whole rows fit the byte budget: keep the full feature width (1-D grid
        # over batch, fully contiguous row-band DMAs).
        tf = feat
        tb_cap = max(1, target_bytes // row_bytes)
        if batch <= tb_cap:
            tb = batch
        else:
            tb = min(batch, max(8, (tb_cap // 8) * 8))
    else:
        # A single row band exceeds the budget: split the feature axis into
        # 128-lane multiples.
        tb = min_rows
        tf_cap = max(128, target_bytes // (tb * itemsize))
        tf = min(feat, max(128, (tf_cap // 128) * 128))
    return tb, tf


def flatten(x, *, materialize=True, use_dma=True,
            block_bytes=4 * 1024 * 1024, donate=False):
    """Pallas Flatten: x of shape (B, ...) -> (B, prod(rest)), dtype preserved."""
    batch = x.shape[0]
    feat = math.prod(x.shape[1:]) if x.ndim > 1 else 1

    # Row-major collapse of trailing dims: metadata-only (a bitcast in HLO) for
    # a default-layout tensor, exactly what torch.reshape does on contiguous
    # tensors.
    x2d = x.reshape(batch, feat)

    if not materialize or batch == 0 or feat == 0:
        # Highest-value path: no kernel, no HBM traffic.
        return x2d

    itemsize = jnp.dtype(x.dtype).itemsize
    cost = pl.CostEstimate(flops=0, transcendentals=0,
                           bytes_accessed=2 * batch * feat * itemsize)
    io_alias = {0: 0} if donate else {}

    if use_dma:
        # One DMA descriptor covering the whole (contiguous) array.
        return pl.pallas_call(
            _flatten_dma_kernel,
            out_shape=jax.ShapeDtypeStruct((batch, feat), x.dtype),
            in_specs=[pl.BlockSpec(memory_space=pl.ANY)],
            out_specs=pl.BlockSpec(memory_space=pl.ANY),
            scratch_shapes=[pltpu.SemaphoreType.DMA(())],
            cost_estimate=cost,
            input_output_aliases=io_alias,
        )(x2d)

    # Tiled VMEM fallback: byte-sized blocks, lane-dense stores.
    tb, tf = _pick_tiles(batch, feat, itemsize, block_bytes)
    actual_block_bytes = tb * tf * itemsize
    # 2 operands x 2 pipeline buffers per block, plus headroom; capped well
    # under v7x's 64 MiB physical VMEM.
    vmem_limit = min(4 * actual_block_bytes + (4 << 20), 48 << 20)

    if tf == feat:
        grid = (pl.cdiv(batch, tb),)
        in_spec = pl.BlockSpec((tb, tf), lambda i: (i, 0))
        out_spec = pl.BlockSpec((tb, tf), lambda i: (i, 0))
        dim_sem = ("parallel",)
    else:
        grid = (pl.cdiv(batch, tb), pl.cdiv(feat, tf))
        in_spec = pl.BlockSpec((tb, tf), lambda i, j: (i, j))
        out_spec = pl.BlockSpec((tb, tf), lambda i, j: (i, j))
        dim_sem = ("parallel", "parallel")

    return pl.pallas_call(
        _flatten_copy_kernel,
        out_shape=jax.ShapeDtypeStruct((batch, feat), x.dtype),
        grid_spec=pltpu.PrefetchScalarGridSpec(
            num_scalar_prefetch=0,
            grid=grid,
            in_specs=[in_spec],
            out_specs=out_spec,
        ),
        compiler_params=pltpu.CompilerParams(
            dimension_semantics=dim_sem,
            vmem_limit_bytes=vmem_limit,
        ),
        cost_estimate=cost,
        input_output_aliases=io_alias,
    )(x2d)


def _reference(x):
    # Pure-JAX reference mirroring the PyTorch forward.
    return x.reshape(x.shape[0], -1)


if __name__ == "__main__":
    key = jax.random.PRNGKey(0)

    batch, channels, spatial = 2, 4, 16
    x = jax.random.normal(key, (batch, channels, spatial, spatial), dtype=jnp.float32)
    ref = _reference(x)

    # Default path: single whole-array HBM -> HBM DMA.
    y_dma = jax.block_until_ready(flatten(x))
    assert y_dma.shape == (batch, channels * spatial * spatial), y_dma.shape
    assert y_dma.dtype == x.dtype
    assert jnp.array_equal(y_dma, ref)

    # Tiled-VMEM fallback, small byte budget to exercise a 2-D grid.
    y_tiled = jax.block_until_ready(flatten(x, use_dma=False, block_bytes=2048))
    assert y_tiled.shape == ref.shape and y_tiled.dtype == x.dtype
    assert jnp.array_equal(y_tiled, ref)

    # Metadata-only path (what callers should prefer when no fresh buffer is
    # required).
    y_view = jax.block_until_ready(flatten(x, materialize=False))
    assert jnp.array_equal(y_view, ref)

    print("KERNEL_OK")
</pallas_src>

<mosaic_0001>
module attributes {stable_mosaic.version = 11 : i64} {
  func.func @_flatten_dma_kernel(%arg0: memref<2x1024xf32, #tpu.memory_space<any>>, %arg1: memref<2x1024xf32, #tpu.memory_space<any>>, %arg2: memref<!tpu.dma_semaphore, #tpu.memory_space<semaphore_mem>>) attributes {dimension_semantics = [], scalar_prefetch = 0 : i64, scratch_operands = 1 : i64, tpu.core_type = #tpu.core_type<tc>} {
    tpu.enqueue_dma source(%arg0 : memref<2x1024xf32, #tpu.memory_space<any>>) target(%arg1 : memref<2x1024xf32, #tpu.memory_space<any>>) target_semaphore(%arg2 : memref<!tpu.dma_semaphore, #tpu.memory_space<semaphore_mem>>)
    tpu.wait_dma2 semaphore(%arg2 : memref<!tpu.dma_semaphore, #tpu.memory_space<semaphore_mem>>) src(%arg0 : memref<2x1024xf32, #tpu.memory_space<any>>) dst(%arg1 : memref<2x1024xf32, #tpu.memory_space<any>>)
    return
  }
}

</mosaic_0001>

<bundles_post_ra>
// kernel: tpu_custom_call.1
= control target key start
LH: loop header
LB: loop body
LE: loop exit
PB: predicated region body
PF: predicated region fallthrough
CT: control target
= control target key end

     0   :  { %s35_s6 = smov [#allocation2]   ;;  %s36_s7 = smov [#allocation3]   ;;  %s54_s0 = inlined_call_operand.hbm [shape: f32[2,1024], index: 0, kind: input, shape index: {}]   ;;  %s55_s1 = inlined_call_operand.hbm [shape: f32[2,1024], index: 1, kind: output, shape index: {}]  }
   0x1   :  { %s37_s8 = smov 0  }
   0x2   :  { %18 = dma.general %s54_s0, 256, %s55_s1, %s35_s6, %s36_s7, [#allocation4], %s37_s8, 0  }
   0x3   :  { %33 = dma.done.wait [#allocation2], 256 }
   0x4   :  { %34 = vsyncadd [#allocation2], 4294967040 }
   0x5   :  { %23 = vsyncmov [#allocation2] }
   0x8   :  { %s24_s13 = vpop.sfrf %23 }
   0x9   :  { %p29_p0 = scmp.ne.s32.totalorder %s24_s13, 0 }
   0xb   :  { %28 = shalt.err (%p29_p0)  }

</bundles_post_ra>
